<compile_context>
chip_gen: v5e
topology: v5e:2x2
jax: 0.10.0
libtpu: 0.0.40
codegen_flags: <defaults>
</compile_context>

<pallas_src>
import functools
import math

import jax
import jax.numpy as jnp
from jax import lax
from jax.experimental import pallas as pl
from jax.experimental.pallas import tpu as pltpu


def _round_up(x, m):
    return ((x + m - 1) // m) * m


def _tpu_generation():
    """Best-effort TPU generation (5/6/7); 0 if unknown / not a TPU."""
    try:
        kind = jax.devices()[0].device_kind.lower()
    except Exception:
        return 0
    for g in (7, 6, 5):
        if f"v{g}" in kind:
            return g
    return 0


def _vmem_step_bytes(tq, skp, dk, dvp):
    """Rough per-grid-step VMEM footprint: double-buffered pipeline tiles plus
    the f32 softmax intermediates that live in vregs/VMEM."""
    kv = 2 * skp * (dk + dvp) * 4            # K + V tiles (f32, x2 buffers)
    qo = 2 * tq * dk * 4 + 2 * tq * dvp * 4  # Q in + ctx out
    mo = 2 * tq * skp * (1 + 4)              # mask in (i8) + attn out (f32)
    wk = 3 * tq * skp * 4                    # scores / exp / attn live values
    return kv + qo + mo + wk


def _sdpa_kernel(q_ref, k_ref, v_ref, mask_ref, ctx_ref, attn_ref, *,
                 scale, sk_valid):
    # q_ref:    (1, TQ,  Dk)   f32
    # k_ref:    (1, Skp, Dk)   f32
    # v_ref:    (1, Skp, Dvp)  f32
    # mask_ref: (1, TQ,  Skp)  int8 (nonzero == masked)
    q = q_ref[0].astype(jnp.bfloat16)        # bf16 MXU operands, f32 accumulation
    k = k_ref[0].astype(jnp.bfloat16)

    # scores = Q @ K^T without transposing K: contract Dk of Q against Dk of K.
    scores = lax.dot_general(
        q, k,
        dimension_numbers=(((1,), (1,)), ((), ())),
        preferred_element_type=jnp.float32,
    )
    # 1/sqrt(d_k) on the f32 accumulator (not on Q before the bf16 cast).
    scores = scores * jnp.float32(scale)

    # masked_fill_(attn_mask, -1e9) -- exact reference semantics.
    scores = jnp.where(mask_ref[0] != 0, jnp.float32(-1000000000.0), scores)

    # Numerically stable softmax over the key axis.
    s_max = jnp.max(scores, axis=-1, keepdims=True)
    e = jnp.exp(scores - s_max)

    # Zero padded key columns with a tiny (1, Skp) validity row (pad columns
    # are already at -1e9 via mask padding; this only matters for the
    # fully-masked-row corner case and keeps -inf/NaN out entirely).
    skp = e.shape[-1]
    if sk_valid < skp:
        col = lax.broadcasted_iota(jnp.int32, (1, skp), 1)
        e = e * (col < sk_valid).astype(jnp.float32)

    denom = jnp.sum(e, axis=-1, keepdims=True)
    attn = e * (jnp.float32(1.0) / denom)    # exact (TQ,1) divide -> exact softmax

    # context = attn @ V on the MXU, bf16 operands, f32 accumulation.
    ctx = jnp.dot(attn.astype(jnp.bfloat16), v_ref[0].astype(jnp.bfloat16),
                  preferred_element_type=jnp.float32)

    ctx_ref[0] = ctx.astype(ctx_ref.dtype)
    attn_ref[0] = attn.astype(attn_ref.dtype)


def scaled_dot_product_attention(Q, K, V, attn_mask, *, d_k):
    """Q, K: [B, H, Sq, d_k]; V: [B, H, Sk, d_v]; attn_mask: [B, H|1, Sq, Sk] bool.

    Returns (context [B,H,Sq,d_v] f32, attn [B,H,Sq,Sk] f32)."""
    B, H, Sq, Dk = Q.shape
    Sk = K.shape[2]
    Dv = V.shape[3]
    BH = B * H

    q = Q.reshape(BH, Sq, Dk).astype(jnp.float32)
    k = K.reshape(BH, Sk, Dk).astype(jnp.float32)
    v = V.reshape(BH, Sk, Dv).astype(jnp.float32)

    # Head-broadcast masks stay un-replicated; general masks go to [BH,Sq,Sk].
    if attn_mask.shape == (B, 1, Sq, Sk):
        mask = attn_mask.reshape(B, Sq, Sk).astype(jnp.int8)
        mask_index = lambda i, j: (i // H, j, 0)
    else:
        mask = jnp.broadcast_to(attn_mask, (B, H, Sq, Sk)).reshape(BH, Sq, Sk)
        mask = mask.astype(jnp.int8)
        mask_index = lambda i, j: (i, j, 0)

    # Pad Sk / Dv to multiples of 128 so attn / ctx output stores are lane-dense.
    Skp = _round_up(Sk, 128)
    Dvp = _round_up(Dv, 128)
    if Skp != Sk:
        k = jnp.pad(k, ((0, 0), (0, Skp - Sk), (0, 0)))
        v = jnp.pad(v, ((0, 0), (0, Skp - Sk), (0, 0)))
        mask = jnp.pad(mask, ((0, 0), (0, 0), (0, Skp - Sk)), constant_values=1)
    if Dvp != Dv:
        v = jnp.pad(v, ((0, 0), (0, 0), (0, Dvp - Dv)))

    # Per-generation query-tile candidates and VMEM limit (perf review).
    gen = _tpu_generation()
    if gen >= 7:      # v7x: 64 MiB physical VMEM -> smaller tiles, tighter limit
        vmem_limit = 40 * 1024 * 1024
        tq_cands = (128,) if Skp >= 2048 else (256, 128)
    elif gen == 6:    # v6e: 128 MiB -> larger tiles amortize per-step overhead
        vmem_limit = 96 * 1024 * 1024
        tq_cands = (512, 256, 128)
    elif gen == 5:    # v5e: attn/mask HBM streams dominate; TQ=256 is enough
        vmem_limit = 96 * 1024 * 1024
        tq_cands = (256, 128)
    else:             # unknown backend / interpret mode: conservative defaults
        vmem_limit = 64 * 1024 * 1024
        tq_cands = (256, 128)

    budget = int(0.7 * vmem_limit)
    TQ = tq_cands[-1]
    for cand in tq_cands:
        if _vmem_step_bytes(cand, Skp, Dk, Dvp) <= budget:
            TQ = cand
            break
    # NOTE: if even the smallest TQ with full-Sk residency blows the budget
    # (very long Sk on v7x), the next step is an Sk-tiled online-softmax
    # variant with a third "arbitrary" grid axis; not needed at these sizes.

    # Short sequences: one sublane-aligned tile; otherwise pad Sq to a multiple
    # of TQ (padded query rows are discarded after the call).
    Sq8 = _round_up(Sq, 8)
    if Sq8 <= TQ:
        TQ = Sq8
    Sqp = _round_up(Sq, TQ)
    n_q = Sqp // TQ
    if Sqp != Sq:
        q = jnp.pad(q, ((0, 0), (0, Sqp - Sq), (0, 0)))
        mask = jnp.pad(mask, ((0, 0), (0, Sqp - Sq), (0, 0)))

    scale = 1.0 / math.sqrt(float(d_k))
    kernel = functools.partial(_sdpa_kernel, scale=scale, sk_valid=Sk)

    ctx_p, attn_p = pl.pallas_call(
        kernel,
        out_shape=(
            jax.ShapeDtypeStruct((BH, Sqp, Dvp), jnp.float32),
            jax.ShapeDtypeStruct((BH, Sqp, Skp), jnp.float32),
        ),
        grid_spec=pltpu.PrefetchScalarGridSpec(
            num_scalar_prefetch=0,
            # BH outer, q-tile inner: K/V blocks are constant in j, so their
            # DMA only refires when the batch*head index advances.
            grid=(BH, n_q),
            in_specs=[
                pl.BlockSpec((1, TQ, Dk), lambda i, j: (i, j, 0)),     # Q tile
                pl.BlockSpec((1, Skp, Dk), lambda i, j: (i, 0, 0)),    # K (full)
                pl.BlockSpec((1, Skp, Dvp), lambda i, j: (i, 0, 0)),   # V (full)
                pl.BlockSpec((1, TQ, Skp), mask_index),                # mask tile
            ],
            out_specs=[
                pl.BlockSpec((1, TQ, Dvp), lambda i, j: (i, j, 0)),    # context
                pl.BlockSpec((1, TQ, Skp), lambda i, j: (i, j, 0)),    # attn probs
            ],
        ),
        compiler_params=pltpu.CompilerParams(
            dimension_semantics=("parallel", "parallel"),
            vmem_limit_bytes=vmem_limit,
        ),
    )(q, k, v, mask)

    # Drop query/lane padding and restore [B, H, ...] layout.
    context = ctx_p[:, :Sq, :Dv].reshape(B, H, Sq, Dv)
    attn = attn_p[:, :Sq, :Sk].reshape(B, H, Sq, Sk)
    return context, attn


def _reference(Q, K, V, attn_mask, d_k):
    scores = jnp.matmul(Q, jnp.swapaxes(K, -1, -2)) / jnp.sqrt(jnp.float32(d_k))
    scores = jnp.where(attn_mask, jnp.float32(-1000000000.0), scores)
    attn = jax.nn.softmax(scores, axis=-1)
    context = jnp.matmul(attn, V)
    return context, attn


if __name__ == "__main__":
    # Small shapes consistent with the module: d_k = d_v = 32, seq = 8.
    B, H, S, d_k, d_v = 2, 2, 8, 32, 32
    key = jax.random.PRNGKey(0)
    kq, kk, kv, km = jax.random.split(key, 4)

    Q = jax.random.normal(kq, (B, H, S, d_k), dtype=jnp.float32)
    K = jax.random.normal(kk, (B, H, S, d_k), dtype=jnp.float32)
    V = jax.random.normal(kv, (B, H, S, d_v), dtype=jnp.float32)
    attn_mask = jax.random.bernoulli(km, p=0.25, shape=(B, H, S, S))  # True == masked

    context, attn = scaled_dot_product_attention(Q, K, V, attn_mask, d_k=d_k)
    jax.block_until_ready((context, attn))

    ref_ctx, ref_attn = _reference(Q, K, V, attn_mask, d_k)
    # Softmax normalization is exact; the tolerance floor is set by the bf16
    # MXU operands (bf16 eps ~ 3.9e-3) used for both matmuls per perf review.
    assert jnp.allclose(attn, ref_attn, atol=3e-2, rtol=3e-2), (
        "attn max err %e" % float(jnp.max(jnp.abs(attn - ref_attn))))
    assert jnp.allclose(context, ref_ctx, atol=3e-2, rtol=3e-2), (
        "ctx  max err %e" % float(jnp.max(jnp.abs(context - ref_ctx))))

    print("KERNEL_OK")
</pallas_src>

<mosaic_0001>
module attributes {stable_mosaic.version = 11 : i64} {
  func.func @_sdpa_kernel(%arg0: i32, %arg1: i32, %arg2: memref<1x8x32xf32, #tpu.memory_space<vmem>>, %arg3: memref<1x128x32xf32, #tpu.memory_space<vmem>>, %arg4: memref<1x128x128xf32, #tpu.memory_space<vmem>>, %arg5: memref<1x8x128xi8, #tpu.memory_space<vmem>>, %arg6: memref<1x8x128xf32, #tpu.memory_space<vmem>>, %arg7: memref<1x8x128xf32, #tpu.memory_space<vmem>>) attributes {dimension_semantics = [#tpu.dimension_semantics<parallel>, #tpu.dimension_semantics<parallel>], iteration_bounds = array<i64: 4, 1>, scalar_prefetch = 0 : i64, scratch_operands = 0 : i64, tpu.core_type = #tpu.core_type<tc>, window_params = [{transform_indices = @transform_0, window_bounds = array<i64: 1, 8, 32>}, {transform_indices = @transform_1, window_bounds = array<i64: 1, 128, 32>}, {transform_indices = @transform_2, window_bounds = array<i64: 1, 128, 128>}, {transform_indices = @transform_3, window_bounds = array<i64: 1, 8, 128>}, {transform_indices = @transform_4, window_bounds = array<i64: 1, 8, 128>}, {transform_indices = @transform_5, window_bounds = array<i64: 1, 8, 128>}]} {
    %c0 = arith.constant 0 : index
    %c0_0 = arith.constant 0 : index
    %c0_1 = arith.constant 0 : index
    %0 = vector.load %arg2[%c0, %c0_0, %c0_1] : memref<1x8x32xf32, #tpu.memory_space<vmem>>, vector<1x8x32xf32>
    %1 = vector.shape_cast %0 : vector<1x8x32xf32> to vector<8x32xf32>
    %2 = arith.truncf %1 : vector<8x32xf32> to vector<8x32xbf16>
    %c0_2 = arith.constant 0 : index
    %c0_3 = arith.constant 0 : index
    %c0_4 = arith.constant 0 : index
    %3 = vector.load %arg3[%c0_2, %c0_3, %c0_4] : memref<1x128x32xf32, #tpu.memory_space<vmem>>, vector<1x128x32xf32>
    %4 = vector.shape_cast %3 : vector<1x128x32xf32> to vector<128x32xf32>
    %5 = arith.truncf %4 : vector<128x32xf32> to vector<128x32xbf16>
    %cst = arith.constant dense<0.000000e+00> : vector<8x128xf32>
    %6 = tpu.matmul %2, %5, %cst {dimension_numbers = #tpu.dot_dimension_numbers<[1], [1], [0], [0], [0, 0, 1, 0], [], []>} : vector<8x32xbf16>, vector<128x32xbf16>, vector<8x128xf32> -> vector<8x128xf32>
    %cst_5 = arith.constant 0.176776692 : f32
    %7 = vector.broadcast %cst_5 : f32 to vector<8x128xf32>
    %8 = arith.mulf %6, %7 : vector<8x128xf32>
    %c0_6 = arith.constant 0 : index
    %c0_7 = arith.constant 0 : index
    %c0_8 = arith.constant 0 : index
    %9 = vector.load %arg5[%c0_6, %c0_7, %c0_8] : memref<1x8x128xi8, #tpu.memory_space<vmem>>, vector<1x8x128xi8>
    %10 = vector.shape_cast %9 : vector<1x8x128xi8> to vector<8x128xi8>
    %c0_i8 = arith.constant 0 : i8
    %11 = vector.broadcast %c0_i8 : i8 to vector<8x128xi8>
    %12 = arith.cmpi ne, %10, %11 : vector<8x128xi8>
    %cst_9 = arith.constant -1.000000e+09 : f32
    %13 = vector.broadcast %cst_9 : f32 to vector<8x128xf32>
    %14 = arith.select %12, %13, %8 : vector<8x128xi1>, vector<8x128xf32>
    %cst_10 = arith.constant dense<0xFF800000> : vector<8xf32>
    %15 = vector.multi_reduction <maximumf>, %14, %cst_10 [1] : vector<8x128xf32> to vector<8xf32>
    %16 = vector.shape_cast %15 : vector<8xf32> to vector<8x1xf32>
    %17 = vector.broadcast %16 : vector<8x1xf32> to vector<8x128xf32>
    %18 = arith.subf %14, %17 : vector<8x128xf32>
    %19 = math.exp %18 : vector<8x128xf32>
    %20 = tpu.iota {dimensions = array<i32: 1>} : vector<1x128xi32>
    %c8_i32 = arith.constant 8 : i32
    %21 = vector.broadcast %c8_i32 : i32 to vector<1x128xi32>
    %22 = arith.cmpi slt, %20, %21 : vector<1x128xi32>
    %23 = arith.extui %22 : vector<1x128xi1> to vector<1x128xi32>
    %24 = arith.sitofp %23 : vector<1x128xi32> to vector<1x128xf32>
    %25 = vector.broadcast %24 : vector<1x128xf32> to vector<8x128xf32>
    %26 = arith.mulf %19, %25 : vector<8x128xf32>
    %cst_11 = arith.constant dense<0.000000e+00> : vector<8xf32>
    %27 = vector.multi_reduction <add>, %26, %cst_11 [1] : vector<8x128xf32> to vector<8xf32>
    %28 = vector.shape_cast %27 : vector<8xf32> to vector<8x1xf32>
    %cst_12 = arith.constant 1.000000e+00 : f32
    %29 = vector.broadcast %cst_12 : f32 to vector<8x1xf32>
    %30 = arith.divf %29, %28 : vector<8x1xf32>
    %31 = vector.broadcast %30 : vector<8x1xf32> to vector<8x128xf32>
    %32 = arith.mulf %26, %31 : vector<8x128xf32>
    %33 = arith.truncf %32 : vector<8x128xf32> to vector<8x128xbf16>
    %c0_13 = arith.constant 0 : index
    %c0_14 = arith.constant 0 : index
    %c0_15 = arith.constant 0 : index
    %34 = vector.load %arg4[%c0_13, %c0_14, %c0_15] : memref<1x128x128xf32, #tpu.memory_space<vmem>>, vector<1x128x128xf32>
    %35 = vector.shape_cast %34 : vector<1x128x128xf32> to vector<128x128xf32>
    %36 = arith.truncf %35 : vector<128x128xf32> to vector<128x128xbf16>
    %cst_16 = arith.constant dense<0.000000e+00> : vector<8x128xf32>
    %37 = tpu.matmul %33, %36, %cst_16 {dimension_numbers = #tpu.dot_dimension_numbers<[1], [0], [0], [1], [0, 0, 1, 1], [], []>} : vector<8x128xbf16>, vector<128x128xbf16>, vector<8x128xf32> -> vector<8x128xf32>
    %c0_17 = arith.constant 0 : index
    %c0_18 = arith.constant 0 : index
    %c0_19 = arith.constant 0 : index
    %38 = vector.load %arg6[%c0_17, %c0_18, %c0_19] : memref<1x8x128xf32, #tpu.memory_space<vmem>>, vector<1x8x128xf32>
    %39 = vector.shape_cast %38 : vector<1x8x128xf32> to vector<8x128xf32>
    %40 = vector.shape_cast %37 : vector<8x128xf32> to vector<1x8x128xf32>
    tpu.vector_store %arg6[%c0_17, %c0_18, %c0_19], %40 {strides = array<i32>} : memref<1x8x128xf32, #tpu.memory_space<vmem>>, vector<1x8x128xf32>,
    %c0_20 = arith.constant 0 : index
    %c0_21 = arith.constant 0 : index
    %c0_22 = arith.constant 0 : index
    %41 = vector.load %arg7[%c0_20, %c0_21, %c0_22] : memref<1x8x128xf32, #tpu.memory_space<vmem>>, vector<1x8x128xf32>
    %42 = vector.shape_cast %41 : vector<1x8x128xf32> to vector<8x128xf32>
    %43 = vector.shape_cast %32 : vector<8x128xf32> to vector<1x8x128xf32>
    tpu.vector_store %arg7[%c0_20, %c0_21, %c0_22], %43 {strides = array<i32>} : memref<1x8x128xf32, #tpu.memory_space<vmem>>, vector<1x8x128xf32>,
    return
  }
  func.func @transform_0(%arg0: i32, %arg1: i32) -> (i32, i32, i32) {
    %c0_i32 = arith.constant 0 : i32
    %c0_i32_0 = arith.constant 0 : i32
    return %arg0, %arg1, %c0_i32 : i32, i32, i32
  }
  func.func @transform_1(%arg0: i32, %arg1: i32) -> (i32, i32, i32) {
    %c0_i32 = arith.constant 0 : i32
    %c0_i32_0 = arith.constant 0 : i32
    %c0_i32_1 = arith.constant 0 : i32
    return %arg0, %c0_i32, %c0_i32_0 : i32, i32, i32
  }
  func.func @transform_2(%arg0: i32, %arg1: i32) -> (i32, i32, i32) {
    %c0_i32 = arith.constant 0 : i32
    %c0_i32_0 = arith.constant 0 : i32
    %c0_i32_1 = arith.constant 0 : i32
    return %arg0, %c0_i32, %c0_i32_0 : i32, i32, i32
  }
  func.func @transform_3(%arg0: i32, %arg1: i32) -> (i32, i32, i32) {
    %c0_i32 = arith.constant 0 : i32
    %c0_i32_0 = arith.constant 0 : i32
    return %arg0, %arg1, %c0_i32 : i32, i32, i32
  }
  func.func @transform_4(%arg0: i32, %arg1: i32) -> (i32, i32, i32) {
    %c0_i32 = arith.constant 0 : i32
    %c0_i32_0 = arith.constant 0 : i32
    return %arg0, %arg1, %c0_i32 : i32, i32, i32
  }
  func.func @transform_5(%arg0: i32, %arg1: i32) -> (i32, i32, i32) {
    %c0_i32 = arith.constant 0 : i32
    %c0_i32_0 = arith.constant 0 : i32
    return %arg0, %arg1, %c0_i32 : i32, i32, i32
  }
}

</mosaic_0001>

<bundles_post_ra>
// kernel: tpu_custom_call.1
= control target key start
LH: loop header
LB: loop body
LE: loop exit
PB: predicated region body
PF: predicated region fallthrough
CT: control target
= control target key end

     0   :  { %s1067_s0 = inlined_call_operand.vmem [shape: f32[4,8,32], index: 0, kind: input, shape index: {}]   ;;  %s1068_s1 = inlined_call_operand.vmem [shape: f32[4,128,32], index: 1, kind: input, shape index: {}]   ;;  %s1069_s2 = inlined_call_operand.vmem [shape: f32[4,128,128], index: 2, kind: input, shape index: {}]   ;;  %s1070_s3 = inlined_call_operand.vmem [shape: s8[4,8,128], index: 3, kind: input, shape index: {}]   ;;  %s1071_s4 = inlined_call_operand.hbm [shape: f32[4,8,128], index: 4, kind: output, shape index: {0}]   ;;  %s1072_s5 = inlined_call_operand.hbm [shape: f32[4,8,128], index: 5, kind: output, shape index: {1}]  }
   0x1   :  { %1074 = sst [smem:[#allocation8_spill]] %s1067_s0 }
   0x2   :  { %11 = vsyncpa [#allocation3], 0 }
   0x3   :  { %13 = vsyncpa [#allocation3 + $0x1], 0 }
   0x4   :  { %14 = vsyncpa [#allocation5], 0 }
   0x5   :  { %16 = vsyncpa [#allocation5 + $0x1], 0  ;;  %s885_s18 = smov 0   ;;  %s887_s19 = smov 0  }
   0x6   :  { %s889_s20 = smov 0   ;;  %s891_s21 = smov 0  }
   0x7   :  { %s893_s22 = smov 0   ;;  %s895_s23 = smov 0  }
   0x8 LB: > { %s652_s24 = sadd.s32 4294967295, %s851_s23   ;;  %s653_s25 = sadd.s32 4294967294, %s851_s23   ;;  %s851_s23 = sphi %s895_s23, %s22_s23   ;;  %s847_s22 = sphi %s893_s22, %s1083_s22   ;;  %s843_s21 = sphi %s891_s21, %s1082_s21   ;;  %s839_s20 = sphi %s889_s20, %s1081_s20   ;;  %s835_s19 = sphi %s887_s19, %s1080_s19   ;;  %s831_s18 = sphi %s885_s18, %s1079_s18  }
   0x9   : > { %s34_s26 = sadd.s32 1, %s847_s22  ;;  %s151_s27 = sadd.s32 1, %s839_s20 }
   0xa   : > { %p36_p0 = scmp.ge.s32.totalorder %s34_s26, 4  ;;  %p161_p1 = scmp.ne.s32.totalorder %s839_s20, %s835_s19 }
   0xb   : > { %p162_p2 = scmp.eq.s32.totalorder %s652_s24, 3  ;;  %p167_p3 = scmp.ne.s32.totalorder %s835_s19, %s831_s18 }
   0xc   : > { %s1085_s26 = smov (%p36_p0, %s34_s26), 0  ;;  %p168_p5 = scmp.eq.s32.totalorder %s653_s25, 3 }
   0xd   : > { %p925_p4 = por %p162_p2, %p161_p1  ;;  %s146_s29 = ssub.s32 %s847_s22, %s1085_s26 }
   0xe   : > { %p656_p6 = scmp.ge.s32.totalorder %s851_s23, 1  ;;  %p149_p7 = scmp.eq.s32.totalorder %s146_s29, 0 }
   0xf   : > { %p932_p8 = por %p168_p5, %p167_p3  ;;  %p250_p9 = scmp.lt.s32.totalorder %s851_s23, 5 }
  0x10   : > { %s938_s6 = scalar_select %p149_p7, %s839_s20, %s151_s27  }
  0x11   : > { %p251_p10 = pnand %p656_p6, %p250_p9 }
  0x12   : > { %p302_p11 = scmp.lt.s32.totalorder (!%p251_p10), %s843_s21, 3  ;;  %s1077_s0 = sld [smem:[#allocation8_spill]] (!%p251_p10) }
  0x13   : > { %254 = sbr.rel (%p251_p10) target bundleno = 624 (0x270), region = 36 }
  0x18   : > { %s942_s7 = scalar_select %p302_p11, %s843_s21, 3  ;;  %vm354_vm0 = vcmask 261120   ;;  %v853_v35 = vmov 0   ;;  %v407_v51 = vlaneseq  ;;  %v854_v56 = vmov 0.0  }
  0x1a   : > { %s673_s8 = sshll.u32 %s942_s7, 7  ;;  %s659_s12 = sshll.u32 %s942_s7, 3  ;;  %v408_v54 = vand.u32 127, %v407_v51 }
  0x1b   : > { %s950_s11 = scalar_lea.vmem %s1068_s1, %s673_s8  ;;  %s308_s15 = scalar_lea.vmem %s1077_s0, %s659_s12 }
  0x1c   : > { %v344_v0 = vld [vmem:[%s950_s11 + $0x70] sm:$0xff]  ;;  %v345_v1 = vld [vmem:[%s950_s11 + $0x78] sm:$0xff]  ;;  %v342_v3 = vld [vmem:[%s950_s11 + $0x60] sm:$0xff]  ;;  %s664_s16 = sshll.u32 %s942_s7, 1  ;;  %s990_s9 = scalar_lea.vmem %s1069_s2, %s673_s8  ;;  %vm409_vm3 = vcmp.lt.s32.totalorder %v408_v54, 8 }
  0x1d   : > { %v353_v2 = vpack.c.bf16 %v345_v1, %v344_v0  ;;  %v343_v4 = vld [vmem:[%s950_s11 + $0x68] sm:$0xff]  ;;  %v340_v8 = vld [vmem:[%s950_s11 + $0x50] sm:$0xff]  ;;  %v341_v9 = vld [vmem:[%s950_s11 + $0x58] sm:$0xff]  ;;  %s325_s25 = scalar_lea.vmem %s1070_s3, %s664_s16  ;;  %v666_v57 = vsel %vm409_vm3, 1.0, %v854_v56  ;;  %s1009_s7 = sand.u32 1, %s835_s19  }
  0x1e   : > { %v352_v6 = vpack.c.bf16 %v343_v4, %v342_v3  ;;  %v351_v10 = vpack.c.bf16 %v341_v9, %v340_v8  ;;  %v338_v12 = vld [vmem:[%s950_s11 + $0x40] sm:$0xff]  ;;  %v339_v13 = vld [vmem:[%s950_s11 + $0x48] sm:$0xff]  ;;  %v336_v16 = vld [vmem:[%s950_s11 + $0x30] sm:$0xff]  ;;  %s1073_s8 = sshll.u32 %s1009_s7, 3  ;;  %s477_s17 = scalar_lea.sflag [#allocation5], %s1009_s7 }
  0x1f   : > { %v380_v5 = vsel %vm354_vm0, %v353_v2, 0  ;;  %v350_v14 = vpack.c.bf16 %v339_v13, %v338_v12  ;;  %v337_v17 = vld [vmem:[%s950_s11 + $0x38] sm:$0xff]  ;;  %v334_v20 = vld [vmem:[%s950_s11 + $0x20] sm:$0xff]  ;;  %v335_v21 = vld [vmem:[%s950_s11 + $0x28] sm:$0xff]  ;;  %s301_s10 = scalar_lea.vmem [#allocation4], %s1073_s8 }
  0x20   : > { %382 = vmatpush.bf16.xpose.msra.mxu0 %v380_v5  ;;  %v377_v7 = vsel %vm354_vm0, %v352_v6, 0  ;;  %v374_v11 = vsel %vm354_vm0, %v351_v10, 0  ;;  %v349_v18 = vpack.c.bf16 %v337_v17, %v336_v16  ;;  %v348_v22 = vpack.c.bf16 %v335_v21, %v334_v20  ;;  %v332_v24 = vld [vmem:[%s950_s11 + $0x10] sm:$0xff]  ;;  %v333_v25 = vld [vmem:[%s950_s11 + $0x18] sm:$0xff]  ;;  %v330_v28 = vld [vmem:[%s950_s11] sm:$0xff] }
  0x21   : > { %v371_v15 = vsel %vm354_vm0, %v350_v14, 0  ;;  %v347_v26 = vpack.c.bf16 %v333_v25, %v332_v24  ;;  %v331_v29 = vld [vmem:[%s950_s11 + $0x8] sm:$0xff]  ;;  %v328_v32 = vld [vmem:[%s308_s15] sm:$0xff]  ;;  %v446_v42 = vld [vmem:[%s990_s9 + $0x70] sm:$0xff]  ;;  %s669_s11 = sshll.u32 %s843_s21, 3  ;;  %s505_s15 = sshll.u32 %s301_s10, 4  ;;  %s506_s15 = int_to_ptr.vmem [resolvable:$true] %s505_s15 }
  0x22   : > { %v368_v19 = vsel %vm354_vm0, %v349_v18, 0  ;;  %v365_v23 = vsel %vm354_vm0, %v348_v22, 0  ;;  %v346_v30 = vpack.c.bf16 %v331_v29, %v330_v28  ;;  %v329_v33 = vpack.c.bf16 %v328_v32, %v328_v32  ;;  %v396_v34 = vld [vmem:[%s325_s25] sm:$0x3]  ;;  %v447_v43 = vld [vmem:[%s990_s9 + $0x78] sm:$0xff]  ;;  %v445_v46 = vld [vmem:[%s990_s9 + $0x68] sm:$0xff]  ;;  %s503_s14 = scalar_lea.hbm %s1072_s5, %s669_s11 }
  0x23   : > { %v362_v27 = vsel %vm354_vm0, %v347_v26, 0  ;;  %vm397_vm1 = vnez %v396_v34  ;;  %v444_v44 = vld [vmem:[%s990_s9 + $0x60] sm:$0xff]  ;;  %v455_v45 = vpack.c.bf16 %v447_v43, %v446_v42  ;;  %v442_v48 = vld [vmem:[%s990_s9 + $0x50] sm:$0xff]  ;;  %v443_v49 = vld [vmem:[%s990_s9 + $0x58] sm:$0xff]  ;;  %s507_s16 = sshll.u32 %s503_s14, 4  ;;  %s761_s21 = scalar_lea.hbm %s1072_s5, 32  ;;  %s508_s16 = int_to_ptr.hbm [resolvable:$true] %s507_s16 }
  0x24   : > { %v359_v31 = vsel %vm354_vm0, %v346_v30, 0  ;;  %v398_v36 = vsel %vm397_vm1, 16843009, %v853_v35  ;;  %v454_v47 = vpack.c.bf16 %v445_v46, %v444_v44  ;;  %v453_v50 = vpack.c.bf16 %v443_v49, %v442_v48  ;;  %v440_v60 = vld [vmem:[%s990_s9 + $0x40] sm:$0xff]  ;;  %v441_v61 = vld [vmem:[%s990_s9 + $0x48] sm:$0xff]  ;;  %v438_v63 = vld [vmem:[%s990_s9 + $0x30] sm:$0xff] }
  0x25   : > { %v399_v37 = vunpack.c.0.s8 %v398_v36  ;;  %456 = vmatpush.bf16.msra.mxu1 %v455_v45  ;;  %v452_v62 = vpack.c.bf16 %v441_v61, %v440_v60  ;;  %v439_v0 = vld [vmem:[%s990_s9 + $0x38] sm:$0xff]  ;;  %v436_v2 = vld [vmem:[%s990_s9 + $0x20] sm:$0xff]  ;;  %v437_v3 = vld [vmem:[%s990_s9 + $0x28] sm:$0xff]  ;;  %s755_s24 = sshra.s32 %s508_s16, 4  ;;  %s756_s24 = int_to_ptr.hbm [resolvable:$true] %s755_s24 }
  0x26   : > { %v451_v1 = vpack.c.bf16 %v439_v0, %v438_v63  ;;  %v450_v4 = vpack.c.bf16 %v437_v3, %v436_v2  ;;  %v434_v5 = vld [vmem:[%s990_s9 + $0x10] sm:$0xff]  ;;  %v435_v6 = vld [vmem:[%s990_s9 + $0x18] sm:$0xff]  ;;  %v432_v8 = vld [vmem:[%s990_s9] sm:$0xff]  ;;  %s757_s25 = scalar_lea.hbm %s756_s24, 8  ;;  %p762_p1 = scmp.lt.s32.totalorder %s756_s24, %s1072_s5 }
  0x27   : > { %vm400_vm2 = vcmp.ne.s32.totalorder %v399_v37, 0  ;;  %v433_v9 = vld [vmem:[%s990_s9 + $0x8] sm:$0xff]  ;;  %p758_p12 = scmp.ne.s32.totalorder %s756_s24, %s757_s25  ;;  %p763_p2 = scmp.lt.s32.totalorder %s761_s21, %s757_s25 }
  0x28   : > { %383 = vmatpush.bf16.xpose.msra.mxu0 %v377_v7  ;;  %v449_v7 = vpack.c.bf16 %v435_v6, %v434_v5  ;;  %v448_v10 = vpack.c.bf16 %v433_v9, %v432_v8 }
  0x29   : > { %457 = vmatpush.bf16.msra.mxu1 %v454_v47  ;;  %p759_p13 = pnand %p758_p12, %p925_p4  ;;  %p764_p3 = por %p763_p2, %p762_p1 }
  0x2b   : > { %p760_p0 = pneg %p759_p13 }
  0x2d   : > { %458 = vmatpush.bf16.msra.mxu1 %v453_v50  ;;  %p765_p5 = pnand %p764_p3, %p760_p0 }
  0x30   : > { %384 = vmatpush.bf16.xpose.msra.mxu0 %v374_v11 }
  0x31   : > { %459 = vmatpush.bf16.msra.mxu1 %v452_v62 }
  0x35   : > { %460 = vmatpush.bf16.msra.mxu1 %v451_v1 }
  0x38   : > { %385 = vmatpush.bf16.xpose.msra.mxu0 %v371_v15 }
  0x39   : > { %461 = vmatpush.bf16.msra.mxu1 %v450_v4 }
  0x3d   : > { %462 = vmatpush.bf16.msra.mxu1 %v449_v7 }
  0x40   : > { %386 = vmatpush.bf16.xpose.msra.mxu0 %v368_v19 }
  0x41   : > { %463 = vmatpush.bf16.msra.mxu1 %v448_v10 }
  0x48   : > { %387 = vmatpush.bf16.xpose.msra.mxu0 %v365_v23 }
  0x50   : > { %388 = vmatpush.bf16.xpose.msra.mxu0 %v362_v27 }
  0x58   : > { %389 = vmatpush.bf16.xpose.msra.mxu0 %v359_v31 }
  0x5f   : > { %665 = vmatmul.msk.bf16.vlgmr.msra.gmra.mxu0 %vm354_vm0, %v329_v33 }
  0xdc   : > { %v391_v38 = vpop.f32.mrf.mxu0 }
  0xdd   : > { %v395_v39 = vmul.f32 0.17677669, %v391_v38 }
  0xdf   : > { %v401_v40 = vsel %vm400_vm2, -1e+09, %v395_v39 }
  0xe0   : > { %402 = vmax.xlane.f32.xlu0 %v401_v40 }
  0xe4   : > { %v393_v41 = vpop.f32.mrf.mxu0 }
 0x153   : > { %v403_v52 = vpop.xlane.xlu0 %402 }
 0x154   : > { %v404_v53 = vsub.f32 %v401_v40, %v403_v52 }
 0x156   : > { %v405_v55 = vmul.f32 1.442695, %v404_v53 }
 0x158   : > { %737 = vpow2.f32 %v405_v55 }
 0x15e   : > { %v738_v58 = vpop.eup %737 }
 0x15f   : > { %v412_v59 = vmul.f32 %v738_v58, %v666_v57 }
 0x161   : > { %413 = vadd.xlane.f32.xlu0 %v412_v59 }
 0x1d4   : > { %v414_v11 = vpop.xlane.xlu0 %413 }
 0x1d5   : > { %739 = vrcp.f32 %v414_v11  ;;  %v426_v15 = vand.u32 2147483648, %v414_v11  ;;  %v424_v17 = vand.u32 2147483647, %v414_v11  ;;  %vm420_vm5 = vweird.f32 %v414_v11 }
 0x1d7   : > { %v427_v19 = vor.u32 1.1754944e-38, %v426_v15  ;;  %vm425_vm7 = vcmp.eq.f32.partialorder %v424_v17, 8.507059e+37 }
 0x1db   : > { %v740_v12 = vpop.eup %739 }
 0x1dc   : > { %v416_v13 = vmul.f32 %v740_v12, %v414_v11  ;;  %vm421_vm4 = vweird.f32 %v740_v12 }
 0x1dd   : > { %vm422_vm6 = vmor %vm420_vm5, %vm421_vm4 }
 0x1de   : > { %v417_v14 = vsub.f32 1.0, %v416_v13 }
 0x1e0   : > { %v418_v16 = vmul.f32 %v740_v12, %v417_v14 }
 0x1e2   : > { %v419_v18 = vadd.f32 %v740_v12, %v418_v16 }
 0x1e4   : > { %v423_v20 = vsel %vm422_vm6, %v740_v12, %v419_v18 }
 0x1e5   : > { %v428_v21 = vsel %vm425_vm7, %v427_v19, %v423_v20 }
 0x1e6   : > { %v430_v22 = vmul.f32 %v428_v21, %v412_v59 }
 0x1e8   : > { %v431_v23 = vpack.c.bf16 %v430_v22, %v430_v22  ;;  %470 = vst [vmem:[%s301_s10] sm:$0xff] %v430_v22 }
 0x1ea   : > { %464 = vmatmul.bf16.vlgmr.msra.gmra.mxu1 %v431_v23 }
 0x1eb   : > { %768 = shalt.err (!%p765_p5)
}
 0x1ec   : > { %676 = dma.vmem_to_hbm [thread:$0]  (%p925_p4), %s506_s15, 128, %s508_s16, %s477_s17  }
 0x1ed   : > { %s488_s13 = scalar_lea.hbm %s1071_s4, %s669_s11  ;;  %s1078_s14 = sshll.u32 %s1009_s7, 3 }
 0x1ee   : > { %s294_s27 = scalar_lea.vmem [#allocation2], %s1078_s14  ;;  %s492_s0 = sshll.u32 %s488_s13, 4  ;;  %s493_s0 = int_to_ptr.hbm [resolvable:$true] %s492_s0 }
 0x1ef   : > { %s490_s29 = sshll.u32 %s294_s27, 4  ;;  %s472_s8 = scalar_lea.sflag [#allocation3], %s1009_s7  ;;  %s491_s29 = int_to_ptr.vmem [resolvable:$true] %s490_s29 }
 0x1f0   : > { %s783_s24 = sshra.s32 %s493_s0, 4  ;;  %s789_s11 = scalar_lea.hbm %s1071_s4, 32  ;;  %s784_s24 = int_to_ptr.hbm [resolvable:$true] %s783_s24 }
 0x1f1   : > { %s785_s25 = scalar_lea.hbm %s784_s24, 8  ;;  %p790_p10 = scmp.lt.s32.totalorder %s784_s24, %s1071_s4 }
 0x1f2   : > { %p786_p6 = scmp.ne.s32.totalorder %s784_s24, %s785_s25  ;;  %p791_p11 = scmp.lt.s32.totalorder %s789_s11, %s785_s25 }
 0x1f4   : > { %p787_p7 = pnand %p786_p6, %p925_p4  ;;  %p792_p12 = por %p791_p11, %p790_p10 }
 0x1f6   : > { %p788_p9 = pneg %p787_p7 }
 0x1f8   : > { %p793_p13 = pnand %p792_p12, %p788_p9 }
 0x267   : > { %v465_v24 = vpop.f32.mrf.mxu1 }
 0x268   : > { %469 = vst [vmem:[%s294_s27] sm:$0xff] %v465_v24 }
 0x269   : > { %796 = shalt.err (!%p793_p13)
}
 0x26a   : > { %675 = dma.vmem_to_hbm [thread:$0]  (%p925_p4), %s491_s29, 128, %s493_s0, %s472_s8  }
 0x26f   : > { %v467_v25 = vpop.f32.mrf.mxu1 }
 0x270 PF: > { %p686_p0 = scmp.ge.s32.totalorder %s851_s23, 2  ;;  %s519_s7 = sand.u32 1, %s831_s18  }
 0x271   : > { %s520_s9 = scalar_lea.sflag [#allocation3], %s519_s7 }
 0x272   : > { %p680_p1 = pnand %p686_p0, %p932_p8 }
 0x274   : > { %p681_p2 = pneg %p680_p1 }
 0x276   : > { %822 = dma.done.wait (%p681_p2), %s520_s9, 128  }
 0x277   : > { %824 = vsyncadd (%p681_p2), %s520_s9, 4294967168  ;;  %s530_s10 = scalar_lea.sflag [#allocation5], %s519_s7 }
 0x278   : > { %826 = dma.done.wait (%p681_p2), %s530_s10, 128  }
 0x279   : > { %828 = vsyncadd (%p681_p2), %s530_s10, 4294967168  ;;  %s22_s23 = sadd.s32 1, %s851_s23   ;;  %s1079_s18 = smov %s835_s19 }
 0x27a   : > { %p19_p3 = scmp.ge.s32.totalorder %s22_s23, 6   ;;  %s1080_s19 = smov %s839_s20 }
 0x27b   : > { %s1081_s20 = smov %s938_s6  ;;  %s1082_s21 = smov %s847_s22 }
 0x27c   : > { %s1083_s22 = smov %s1085_s26  ;;  %21 = sbr.rel (!%p19_p3) target bundleno = 8 (0x8), region = 97 }
 0x281   :  { %536 = vsyncpa [#allocation3], 1 }
 0x282   :  { %538 = vsyncpa [#allocation3 + $0x1], 1 }
 0x283   :  { %539 = vsyncpa [#allocation5], 1 }
 0x284   :  { %541 = vsyncpa [#allocation5 + $0x1], 1 }

</bundles_post_ra>
